<compile_context>
chip_gen: v7x
topology: tpu7x:2x2x1
jax: 0.10.0
libtpu: 0.0.40
codegen_flags: <defaults>
</compile_context>

<pallas_src>
import functools

import jax
import jax.numpy as jnp
from jax import lax
from jax.experimental import pallas as pl
from jax.experimental.pallas import tpu as pltpu


def _repr_loss_kernel(zi_ref, zj_ref, o_ref, *, inv_temp: float, tm: int):
    """One grid step handles rows [r0, r0+tm) of BOTH halves of z = [z_i; z_j]."""
    B = zi_ref.shape[0]
    blk = pl.program_id(0)
    r0 = pl.multiple_of(blk * tm, tm)

    zi_full = zi_ref[...]                      # (B, Dp)  resident RHS
    zj_full = zj_ref[...]                      # (B, Dp)
    zi_blk = zi_ref[pl.ds(r0, tm), :]          # (tm, Dp) current rows
    zj_blk = zj_ref[pl.ds(r0, tm), :]

    f32 = jnp.float32
    # Contract the last axis of both operands -> MXU consumes the RHS
    # transposed natively, no explicit transpose / extra VMEM buffer.
    dn = (((1,), (1,)), ((), ()))
    sim_ii = lax.dot_general(zi_blk, zi_full, dn, preferred_element_type=f32) * inv_temp
    sim_ij = lax.dot_general(zi_blk, zj_full, dn, preferred_element_type=f32) * inv_temp
    sim_ji = lax.dot_general(zj_blk, zi_full, dn, preferred_element_type=f32) * inv_temp
    sim_jj = lax.dot_general(zj_blk, zj_full, dn, preferred_element_type=f32) * inv_temp

    # Positive logit (z_i[r] . z_j[r]) / T, shared by both halves (what the
    # PyTorch module uses via the symmetric diagonal). Accumulate in f32.
    pos = jnp.sum(zi_blk.astype(f32) * zj_blk.astype(f32), axis=1,
                  keepdims=True) * inv_temp                      # (tm, 1)

    # Mask only the self-similarity column of each half's own block.
    row = lax.broadcasted_iota(jnp.int32, (tm, B), 0)
    col = lax.broadcasted_iota(jnp.int32, (tm, B), 1)
    self_mask = col == (row + r0)
    neg_inf = f32(-1e30)
    sim_ii = jnp.where(self_mask, neg_inf, sim_ii)
    sim_jj = jnp.where(self_mask, neg_inf, sim_jj)

    # Row-wise logsumexp over all N columns (minus the masked self column),
    # computed half-by-half to avoid a lane concat.
    m_i = jnp.maximum(jnp.max(sim_ii, axis=1, keepdims=True),
                      jnp.max(sim_ij, axis=1, keepdims=True))
    s_i = (jnp.sum(jnp.exp(sim_ii - m_i), axis=1, keepdims=True)
           + jnp.sum(jnp.exp(sim_ij - m_i), axis=1, keepdims=True))
    ce_i = jnp.log(s_i) + m_i - pos                              # (tm, 1)

    m_j = jnp.maximum(jnp.max(sim_ji, axis=1, keepdims=True),
                      jnp.max(sim_jj, axis=1, keepdims=True))
    s_j = (jnp.sum(jnp.exp(sim_ji - m_j), axis=1, keepdims=True)
           + jnp.sum(jnp.exp(sim_jj - m_j), axis=1, keepdims=True))
    ce_j = jnp.log(s_j) + m_j - pos                              # (tm, 1)

    # Partial sum of CE for the 2*tm rows handled by this block.
    o_ref[...] = jnp.sum(ce_i + ce_j, axis=0, keepdims=True)     # (1, 1)


def _pick_row_tile(B: int, Dp: int, itemsize: int) -> int:
    """Largest row tile whose sim slabs + temporaries fit comfortably in the
    default scoped VMEM of every TPU generation (v5e 16 MiB is the binding one)."""
    budget = 12 * 1024 * 1024
    resident = 2 * B * Dp * itemsize            # z_i + z_j kept resident
    avail = max(budget - resident, 1 << 21)
    cap = max(avail // (8 * B * 4), 8)          # ~8 * tm * B f32 bytes of slabs/temps
    for tm in (512, 256, 128, 64, 32, 16, 8):
        if tm <= cap and B % tm == 0:
            return tm
    return B                                    # fallback: single block per half


def representation_loss(z_i, z_j, temperature: float):
    B, D = z_i.shape
    N = 2 * B
    # Pad feature axis to a 128-lane multiple; zero padding leaves dots unchanged.
    Dp = ((D + 127) // 128) * 128
    if Dp != D:
        z_i = jnp.pad(z_i, ((0, 0), (0, Dp - D)))
        z_j = jnp.pad(z_j, ((0, 0), (0, Dp - D)))

    tm = _pick_row_tile(B, Dp, z_i.dtype.itemsize)
    grid = B // tm

    kernel = functools.partial(_repr_loss_kernel, inv_temp=1.0 / temperature, tm=tm)
    partials = pl.pallas_call(
        kernel,
        out_shape=jax.ShapeDtypeStruct((1, grid), jnp.float32),
        grid=(grid,),
        in_specs=[
            pl.BlockSpec((B, Dp), lambda i: (0, 0)),   # full z_i, DMA'd once, resident
            pl.BlockSpec((B, Dp), lambda i: (0, 0)),   # full z_j, DMA'd once, resident
        ],
        out_specs=pl.BlockSpec((1, 1), lambda i: (0, i)),
        compiler_params=pltpu.CompilerParams(
            dimension_semantics=("parallel",)),
    )(z_i, z_j)

    # mean over N rows, then the extra "bias /= N" from the module.
    return jnp.sum(partials) / jnp.float32(N * N)


def representation_loss_ref(z_i, z_j, temperature: float):
    """Pure-JAX reference mirroring the PyTorch module."""
    B = z_i.shape[0]
    N = 2 * B
    z = jnp.concatenate([z_i, z_j], axis=0).astype(jnp.float32)
    sim = (z @ z.T) / temperature
    sim_i_j = jnp.diagonal(sim, offset=B)                     # length B
    positive = jnp.concatenate([sim_i_j, sim_i_j]).reshape(N, 1)
    idx = jnp.arange(N)
    mask = jnp.ones((N, N), dtype=bool)
    mask = mask.at[idx, idx].set(False)
    mask = mask.at[jnp.arange(B), jnp.arange(B) + B].set(False)
    mask = mask.at[jnp.arange(B) + B, jnp.arange(B)].set(False)
    negatives = sim[mask].reshape(N, N - 2)
    logits = jnp.concatenate([positive, negatives], axis=1)   # (N, N-1)
    lse = jax.scipy.special.logsumexp(logits, axis=1)
    ce = jnp.mean(lse - logits[:, 0])
    return ce / N


if __name__ == "__main__":
    B, D = 8, 32
    temperature = 0.5
    key = jax.random.PRNGKey(0)
    k1, k2 = jax.random.split(key)
    z_i = jax.random.normal(k1, (B, D), dtype=jnp.float32)
    z_j = jax.random.normal(k2, (B, D), dtype=jnp.float32)

    loss = representation_loss(z_i, z_j, temperature)
    jax.block_until_ready(loss)

    ref = representation_loss_ref(z_i, z_j, temperature)
    assert jnp.allclose(loss, ref, rtol=1e-5, atol=1e-5), (loss, ref)

    print("KERNEL_OK")
</pallas_src>

<mosaic_0001>
module attributes {stable_mosaic.version = 11 : i64} {
  func.func @_repr_loss_kernel(%arg0: i32, %arg1: memref<8x128xf32, #tpu.memory_space<vmem>>, %arg2: memref<8x128xf32, #tpu.memory_space<vmem>>, %arg3: memref<1x1xf32, #tpu.memory_space<vmem>>) attributes {dimension_semantics = [#tpu.dimension_semantics<parallel>], iteration_bounds = array<i64: 1>, scalar_prefetch = 0 : i64, scratch_operands = 0 : i64, tpu.core_type = #tpu.core_type<tc>, window_params = [{pipeline_mode = #tpu.pipeline_mode<synchronous>, transform_indices = @transform_0, window_bounds = array<i64: 8, 128>}, {pipeline_mode = #tpu.pipeline_mode<synchronous>, transform_indices = @transform_1, window_bounds = array<i64: 8, 128>}, {transform_indices = @transform_2, window_bounds = array<i64: 1, 1>}]} {
    %c8_i32 = arith.constant 8 : i32
    %0 = arith.muli %arg0, %c8_i32 : i32
    %1 = tpu.assume_multiple %0, 8 : i32
    %c0 = arith.constant 0 : index
    %c0_0 = arith.constant 0 : index
    %2 = vector.load %arg1[%c0, %c0_0] : memref<8x128xf32, #tpu.memory_space<vmem>>, vector<8x128xf32>
    %c0_1 = arith.constant 0 : index
    %c0_2 = arith.constant 0 : index
    %3 = vector.load %arg2[%c0_1, %c0_2] : memref<8x128xf32, #tpu.memory_space<vmem>>, vector<8x128xf32>
    %4 = arith.index_cast %1 : i32 to index
    %c0_3 = arith.constant 0 : index
    %5 = vector.load %arg1[%4, %c0_3] : memref<8x128xf32, #tpu.memory_space<vmem>>, vector<8x128xf32>
    %6 = arith.index_cast %1 : i32 to index
    %c0_4 = arith.constant 0 : index
    %7 = vector.load %arg2[%6, %c0_4] : memref<8x128xf32, #tpu.memory_space<vmem>>, vector<8x128xf32>
    %cst = arith.constant dense<0.000000e+00> : vector<8x8xf32>
    %8 = tpu.matmul %5, %2, %cst {dimension_numbers = #tpu.dot_dimension_numbers<[1], [1], [0], [0], [0, 0, 1, 0], [], []>} : vector<8x128xf32>, vector<8x128xf32>, vector<8x8xf32> -> vector<8x8xf32>
    %cst_5 = arith.constant 2.000000e+00 : f32
    %9 = vector.broadcast %cst_5 : f32 to vector<8x8xf32>
    %10 = arith.mulf %8, %9 : vector<8x8xf32>
    %cst_6 = arith.constant dense<0.000000e+00> : vector<8x8xf32>
    %11 = tpu.matmul %5, %3, %cst_6 {dimension_numbers = #tpu.dot_dimension_numbers<[1], [1], [0], [0], [0, 0, 1, 0], [], []>} : vector<8x128xf32>, vector<8x128xf32>, vector<8x8xf32> -> vector<8x8xf32>
    %cst_7 = arith.constant 2.000000e+00 : f32
    %12 = vector.broadcast %cst_7 : f32 to vector<8x8xf32>
    %13 = arith.mulf %11, %12 : vector<8x8xf32>
    %cst_8 = arith.constant dense<0.000000e+00> : vector<8x8xf32>
    %14 = tpu.matmul %7, %2, %cst_8 {dimension_numbers = #tpu.dot_dimension_numbers<[1], [1], [0], [0], [0, 0, 1, 0], [], []>} : vector<8x128xf32>, vector<8x128xf32>, vector<8x8xf32> -> vector<8x8xf32>
    %cst_9 = arith.constant 2.000000e+00 : f32
    %15 = vector.broadcast %cst_9 : f32 to vector<8x8xf32>
    %16 = arith.mulf %14, %15 : vector<8x8xf32>
    %cst_10 = arith.constant dense<0.000000e+00> : vector<8x8xf32>
    %17 = tpu.matmul %7, %3, %cst_10 {dimension_numbers = #tpu.dot_dimension_numbers<[1], [1], [0], [0], [0, 0, 1, 0], [], []>} : vector<8x128xf32>, vector<8x128xf32>, vector<8x8xf32> -> vector<8x8xf32>
    %cst_11 = arith.constant 2.000000e+00 : f32
    %18 = vector.broadcast %cst_11 : f32 to vector<8x8xf32>
    %19 = arith.mulf %17, %18 : vector<8x8xf32>
    %20 = arith.mulf %5, %7 : vector<8x128xf32>
    %cst_12 = arith.constant dense<0.000000e+00> : vector<8xf32>
    %21 = vector.multi_reduction <add>, %20, %cst_12 [1] : vector<8x128xf32> to vector<8xf32>
    %22 = vector.shape_cast %21 : vector<8xf32> to vector<8x1xf32>
    %cst_13 = arith.constant 2.000000e+00 : f32
    %23 = vector.broadcast %cst_13 : f32 to vector<8x1xf32>
    %24 = arith.mulf %22, %23 : vector<8x1xf32>
    %25 = tpu.iota {dimensions = array<i32: 0>} : vector<8x8xi32>
    %26 = tpu.iota {dimensions = array<i32: 1>} : vector<8x8xi32>
    %27 = vector.broadcast %1 : i32 to vector<8x8xi32>
    %28 = arith.addi %25, %27 : vector<8x8xi32>
    %29 = arith.cmpi eq, %26, %28 : vector<8x8xi32>
    %cst_14 = arith.constant -1.000000e+30 : f32
    %30 = vector.broadcast %cst_14 : f32 to vector<8x8xf32>
    %31 = arith.select %29, %30, %10 : vector<8x8xi1>, vector<8x8xf32>
    %cst_15 = arith.constant -1.000000e+30 : f32
    %32 = vector.broadcast %cst_15 : f32 to vector<8x8xf32>
    %33 = arith.select %29, %32, %19 : vector<8x8xi1>, vector<8x8xf32>
    %cst_16 = arith.constant dense<0xFF800000> : vector<8xf32>
    %34 = vector.multi_reduction <maximumf>, %31, %cst_16 [1] : vector<8x8xf32> to vector<8xf32>
    %35 = vector.shape_cast %34 : vector<8xf32> to vector<8x1xf32>
    %cst_17 = arith.constant dense<0xFF800000> : vector<8xf32>
    %36 = vector.multi_reduction <maximumf>, %13, %cst_17 [1] : vector<8x8xf32> to vector<8xf32>
    %37 = vector.shape_cast %36 : vector<8xf32> to vector<8x1xf32>
    %38 = arith.maximumf %35, %37 : vector<8x1xf32>
    %39 = vector.broadcast %38 : vector<8x1xf32> to vector<8x8xf32>
    %40 = arith.subf %31, %39 : vector<8x8xf32>
    %41 = math.exp %40 : vector<8x8xf32>
    %cst_18 = arith.constant dense<0.000000e+00> : vector<8xf32>
    %42 = vector.multi_reduction <add>, %41, %cst_18 [1] : vector<8x8xf32> to vector<8xf32>
    %43 = vector.shape_cast %42 : vector<8xf32> to vector<8x1xf32>
    %44 = vector.broadcast %38 : vector<8x1xf32> to vector<8x8xf32>
    %45 = arith.subf %13, %44 : vector<8x8xf32>
    %46 = math.exp %45 : vector<8x8xf32>
    %cst_19 = arith.constant dense<0.000000e+00> : vector<8xf32>
    %47 = vector.multi_reduction <add>, %46, %cst_19 [1] : vector<8x8xf32> to vector<8xf32>
    %48 = vector.shape_cast %47 : vector<8xf32> to vector<8x1xf32>
    %49 = arith.addf %43, %48 : vector<8x1xf32>
    %50 = math.log %49 : vector<8x1xf32>
    %51 = arith.addf %50, %38 : vector<8x1xf32>
    %52 = arith.subf %51, %24 : vector<8x1xf32>
    %cst_20 = arith.constant dense<0xFF800000> : vector<8xf32>
    %53 = vector.multi_reduction <maximumf>, %16, %cst_20 [1] : vector<8x8xf32> to vector<8xf32>
    %54 = vector.shape_cast %53 : vector<8xf32> to vector<8x1xf32>
    %cst_21 = arith.constant dense<0xFF800000> : vector<8xf32>
    %55 = vector.multi_reduction <maximumf>, %33, %cst_21 [1] : vector<8x8xf32> to vector<8xf32>
    %56 = vector.shape_cast %55 : vector<8xf32> to vector<8x1xf32>
    %57 = arith.maximumf %54, %56 : vector<8x1xf32>
    %58 = vector.broadcast %57 : vector<8x1xf32> to vector<8x8xf32>
    %59 = arith.subf %16, %58 : vector<8x8xf32>
    %60 = math.exp %59 : vector<8x8xf32>
    %cst_22 = arith.constant dense<0.000000e+00> : vector<8xf32>
    %61 = vector.multi_reduction <add>, %60, %cst_22 [1] : vector<8x8xf32> to vector<8xf32>
    %62 = vector.shape_cast %61 : vector<8xf32> to vector<8x1xf32>
    %63 = vector.broadcast %57 : vector<8x1xf32> to vector<8x8xf32>
    %64 = arith.subf %33, %63 : vector<8x8xf32>
    %65 = math.exp %64 : vector<8x8xf32>
    %cst_23 = arith.constant dense<0.000000e+00> : vector<8xf32>
    %66 = vector.multi_reduction <add>, %65, %cst_23 [1] : vector<8x8xf32> to vector<8xf32>
    %67 = vector.shape_cast %66 : vector<8xf32> to vector<8x1xf32>
    %68 = arith.addf %62, %67 : vector<8x1xf32>
    %69 = math.log %68 : vector<8x1xf32>
    %70 = arith.addf %69, %57 : vector<8x1xf32>
    %71 = arith.subf %70, %24 : vector<8x1xf32>
    %72 = arith.addf %52, %71 : vector<8x1xf32>
    %cst_24 = arith.constant dense<0.000000e+00> : vector<1xf32>
    %73 = vector.multi_reduction <add>, %72, %cst_24 [0] : vector<8x1xf32> to vector<1xf32>
    %74 = vector.shape_cast %73 : vector<1xf32> to vector<1x1xf32>
    %c0_25 = arith.constant 0 : index
    %c0_26 = arith.constant 0 : index
    %75 = vector.load %arg3[%c0_25, %c0_26] : memref<1x1xf32, #tpu.memory_space<vmem>>, vector<1x1xf32>
    tpu.vector_store %arg3[%c0_25, %c0_26], %74 {strides = array<i32>} : memref<1x1xf32, #tpu.memory_space<vmem>>, vector<1x1xf32>,
    return
  }
  func.func @transform_0(%arg0: i32) -> (i32, i32) {
    %c0_i32 = arith.constant 0 : i32
    %c0_i32_0 = arith.constant 0 : i32
    %c0_i32_1 = arith.constant 0 : i32
    return %c0_i32, %c0_i32_0 : i32, i32
  }
  func.func @transform_1(%arg0: i32) -> (i32, i32) {
    %c0_i32 = arith.constant 0 : i32
    %c0_i32_0 = arith.constant 0 : i32
    %c0_i32_1 = arith.constant 0 : i32
    return %c0_i32, %c0_i32_0 : i32, i32
  }
  func.func @transform_2(%arg0: i32) -> (i32, i32) {
    %c0_i32 = arith.constant 0 : i32
    %c0_i32_0 = arith.constant 0 : i32
    return %c0_i32, %arg0 : i32, i32
  }
}

</mosaic_0001>

<bundles_post_ra>
// kernel: tpu_custom_call.1
= control target key start
LH: loop header
LB: loop body
LE: loop exit
PB: predicated region body
PF: predicated region fallthrough
CT: control target
= control target key end

     0   :  { %7 = vsyncpa [#allocation3], 0  ;;  %s611_s0 = inlined_call_operand.hbm [shape: f32[8,128], index: 0, kind: input, shape index: {}]   ;;  %s612_s1 = inlined_call_operand.hbm [shape: f32[8,128], index: 1, kind: input, shape index: {}]   ;;  %s613_s2 = inlined_call_operand.hbm [shape: f32[1,1], index: 2, kind: output, shape index: {}]  }
   0x1   :  { %8 = vsyncpa [#allocation6], 0 }
   0x2   :  { %9 = vsyncpa [#allocation4], 0  ;;  %s531_s9 = smov [#allocation2]   ;;  %s532_s11 = smov [#allocation5]  }
   0x3   :  { %s16_s10 = sshll.u32 %s531_s9, 4  ;;  %s26_s12 = sshll.u32 %s532_s11, 4  ;;  %s17_s10 = int_to_ptr.vmem [resolvable:$true] %s16_s10  ;;  %s27_s12 = int_to_ptr.vmem [resolvable:$true] %s26_s12 }
   0x4   :  { %s459_s15 = scalar_lea.hbm %s611_s0, 128 }
   0x5   :  { %p460_p0 = scmp.ne.s32.totalorder %s611_s0, %s459_s15  ;;  %p463_p1 = scmp.lt.u32.totalorder %s459_s15, %s611_s0 }
   0x7   :  { %p465_p2 = pnand %p463_p1, %p460_p0 }
   0x9   :  { %468 = shalt.err (!%p465_p2)
}
   0xa   :  { %s469_s20 = scalar_lea.vmem %s17_s10, 128  ;;  %p474_p4 = scmp.lt.s32.totalorder %s17_s10, %s17_s10 }
   0xb   :  { %p470_p3 = scmp.ne.s32.totalorder %s17_s10, %s469_s20  ;;  %p475_p5 = scmp.lt.s32.totalorder %s469_s20, %s469_s20 }
   0xd   :  { %p476_p6 = por %p475_p5, %p474_p4 }
   0xf   :  { %p477_p7 = pnand %p476_p6, %p470_p3 }
  0x11   :  { %480 = shalt.err (!%p477_p7)
}
  0x12   :  { %19 = dma.hbm_to_vmem [thread:$0]  %s611_s0, 128, %s17_s10, [#allocation3]  }
  0x13   :  { %s481_s25 = scalar_lea.hbm %s612_s1, 128 }
  0x14   :  { %p482_p8 = scmp.ne.s32.totalorder %s612_s1, %s481_s25  ;;  %p485_p9 = scmp.lt.u32.totalorder %s481_s25, %s612_s1 }
  0x16   :  { %p487_p10 = pnand %p485_p9, %p482_p8 }
  0x18   :  { %490 = shalt.err (!%p487_p10)
}
  0x19   :  { %s491_s30 = scalar_lea.vmem %s27_s12, 128  ;;  %p496_p12 = scmp.lt.s32.totalorder %s27_s12, %s27_s12 }
  0x1a   :  { %p492_p11 = scmp.ne.s32.totalorder %s27_s12, %s491_s30  ;;  %p497_p13 = scmp.lt.s32.totalorder %s491_s30, %s491_s30 }
  0x1c   :  { %p498_p0 = por %p497_p13, %p496_p12 }
  0x1e   :  { %p499_p1 = pnand %p498_p0, %p492_p11 }
  0x20   :  { %502 = shalt.err (!%p499_p1)
}
  0x21   :  { %29 = dma.hbm_to_vmem [thread:$0]  %s612_s1, 128, %s27_s12, [#allocation6]  }
  0x22   :  { %525 = dma.done.wait [#allocation3], 128  }
  0x23   :  { %526 = vsyncadd [#allocation3], 4294967168 }
  0x24   :  { %527 = dma.done.wait [#allocation6], 128  }
  0x25   :  { %528 = vsyncadd [#allocation6], 4294967168  ;;  %v533_v0 = vmov 0.0   ;;  %vm534_vm0 = vmmov 0   ;;  %v575_v1 = vld [vmem:[#allocation2] sm:$0xff]  ;;  %v577_v2 = vld [vmem:[#allocation5] sm:$0xff]  ;;  %v331_v3 = vlaneseq }
  0x26   :  { %422 = vmatprep.subr.mxu0 %v533_v0  ;;  %424 = vmatprep.mubr.msk.f32.mxu0 %vm534_vm0, %v533_v0  ;;  %vm340_vm2 = vcmask 64512   ;;  %v327_v46 = vmul.f32 %v577_v2, %v575_v1  ;;  %s535_s1 = smov [#allocation7]   ;;  %vm396_vm3 = vcmask 0  }
  0x27   :  { %427 = vmatprep.subr.mxu1 %v533_v0  ;;  %429 = vmatprep.mubr.msk.f32.mxu1 %vm534_vm0, %v533_v0  ;;  %v332_v4 = vshrl.u32 %v331_v3, 7  ;;  %v334_v5 = vand.u32 127, %v331_v3  ;;  %s404_s4 = sshll.u32 %s535_s1, 4  ;;  %s405_s4 = int_to_ptr.vmem [resolvable:$true] %s404_s4 }
  0x28   :  { %423 = vmatpush3.xpose.msra.mxu0 %v575_v1  ;;  %428 = vmatpush3.xpose.msra.mxu1 %v577_v2  ;;  %s503_s5 = scalar_lea.vmem %s405_s4, 16  ;;  %s507_s6 = scalar_lea.vmem %s405_s4, 32 }
  0x29   :  { %432 = vmatprep.subr.mxu0 %v533_v0  ;;  %437 = vmatprep.subr.mxu1 %v533_v0  ;;  %vm337_vm1 = vcmp.eq.s32.totalorder %v334_v5, %v332_v4  ;;  %p504_p2 = scmp.ne.s32.totalorder %s405_s4, %s503_s5  ;;  %p508_p3 = scmp.lt.s32.totalorder %s405_s4, %s405_s4 }
  0x2a   :  { %p509_p4 = scmp.lt.s32.totalorder %s507_s6, %s503_s5 }
  0x2b   :  { %425 = vmatmul.mubr.f32.vlgmr.msra.gmra.mrb[0].mxu0 %v575_v1  ;;  %430 = vmatmul.mubr.f32.vlgmr.msra.gmra.mrb[0].mxu1 %v575_v1 }
  0x2c   :  { %433 = vmatpush3.xpose.msra.mxu0 %v575_v1  ;;  %434 = vmatprep.mubr.msk.f32.mxu0 %vm534_vm0, %v533_v0  ;;  %p510_p5 = por %p509_p4, %p508_p3 }
  0x2d   :  { %438 = vmatpush3.xpose.msra.mxu1 %v577_v2  ;;  %439 = vmatprep.mubr.msk.f32.mxu1 %vm534_vm0, %v533_v0 }
  0x2e   :  { %p511_p6 = pnand %p510_p5, %p504_p2 }
  0x2f   :  { %435 = vmatmul.mubr.f32.vlgmr.msra.gmra.mrb[2].mxu0 %v577_v2 }
  0x30   :  { %440 = vmatmul.mubr.f32.vlgmr.msra.gmra.mrb[2].mxu1 %v577_v2 }
  0xfe   :  { %v109_v6 = vpop.f32.mrb[0].mxu0  ;;  %v180_v7 = vpop.f32.mrb[0].mxu1 }
  0xff   :  { %v113_v8 = vmul.f32 2.0, %v109_v6  ;;  %v426_v9 = vpop.f32.mrb[1].mxu0  ;;  %v431_v10 = vpop.f32.mrb[1].mxu1  ;;  %v184_v11 = vmul.f32 2.0, %v180_v7 }
 0x101   :  { %v338_v12 = vsel %vm337_vm1, -1e+30, %v113_v8  ;;  %v344_v20 = vsel %vm340_vm2, %v184_v11, -inf }
 0x102   :  { %v251_v13 = vpop.f32.mrb[2].mxu0  ;;  %v341_v14 = vsel %vm340_vm2, %v338_v12, -inf }
 0x103   :  { %v255_v15 = vmul.f32 2.0, %v251_v13  ;;  %342 = vmax.xlane.f32.xlu0 %v341_v14  ;;  %v436_v16 = vpop.f32.mrb[3].mxu0  ;;  %v322_v17 = vpop.f32.mrb[2].mxu1 }
 0x104   :  { %v326_v18 = vmul.f32 2.0, %v322_v17  ;;  %v441_v19 = vpop.f32.mrb[3].mxu1 }
 0x105   :  { %v365_v21 = vsel %vm340_vm2, %v255_v15, -inf }
 0x106   :  { %366 = vmax.xlane.f32.xlu1 %v365_v21  ;;  %v339_v22 = vsel %vm337_vm1, -1e+30, %v326_v18 }
 0x107   :  { %345 = vmax.xlane.f32.xlu0 %v344_v20  ;;  %v368_v23 = vsel %vm340_vm2, %v339_v22, -inf }
 0x10a   :  { %369 = vmax.xlane.f32.xlu1 %v368_v23 }
 0x190   :  { %v343_v24 = vpop.xlane.xlu0 %342 }
 0x193   :  { %v367_v25 = vpop.xlane.xlu1 %366 }
 0x194   :  { %v346_v26 = vpop.xlane.xlu0 %345 }
 0x195   :  { %v347_v27 = vmax.f32 %v343_v24, %v346_v26 }
 0x197   :  { %v348_v28 = vsub.f32 %v338_v12, %v347_v27  ;;  %v354_v29 = vsub.f32 %v184_v11, %v347_v27  ;;  %v370_v30 = vpop.xlane.xlu1 %369 }
 0x198   :  { %v371_v31 = vmax.f32 %v367_v25, %v370_v30 }
 0x199   :  { %v349_v32 = vmul.f32 1.442695, %v348_v28  ;;  %v355_v33 = vmul.f32 1.442695, %v354_v29 }
 0x19a   :  { %v372_v34 = vsub.f32 %v255_v15, %v371_v31  ;;  %v378_v35 = vsub.f32 %v339_v22, %v371_v31 }
 0x19b   :  { %447 = vpow2.f32 %v349_v32 }
 0x19c   :  { %449 = vpow2.f32 %v355_v33  ;;  %v373_v36 = vmul.f32 1.442695, %v372_v34  ;;  %v379_v37 = vmul.f32 1.442695, %v378_v35 }
 0x19e   :  { %451 = vpow2.f32 %v373_v36 }
 0x19f   :  { %453 = vpow2.f32 %v379_v37 }
 0x1a5   :  { %v448_v38 = vpop.eup %447 }
 0x1a6   :  { %v450_v39 = vpop.eup %449  ;;  %v351_v40 = vsel %vm340_vm2, %v448_v38, 0.0 }
 0x1a7   :  { %352 = vadd.xlane.f32.xlu0 %v351_v40  ;;  %v357_v41 = vsel %vm340_vm2, %v450_v39, 0.0 }
 0x1a8   :  { %v452_v42 = vpop.eup %451  ;;  %358 = vadd.xlane.f32.xlu1 %v357_v41 }
 0x1a9   :  { %v454_v43 = vpop.eup %453  ;;  %v375_v44 = vsel %vm340_vm2, %v452_v42, 0.0 }
 0x1aa   :  { %v381_v45 = vsel %vm340_vm2, %v454_v43, 0.0 }
 0x1ab   :  { %376 = vadd.xlane.f32.xlu0 %v375_v44 }
 0x1ac   :  { %382 = vadd.xlane.f32.xlu1 %v381_v45 }
 0x1af   :  { %328 = vadd.xlane.f32.xlu0 %v327_v46 }
 0x234   :  { %v353_v47 = vpop.xlane.xlu0 %352 }
 0x235   :  { %v359_v48 = vpop.xlane.xlu1 %358 }
 0x236   :  { %v360_v49 = vadd.f32 %v359_v48, %v353_v47 }
 0x238   :  { %455 = vlog2.f32 %v360_v49  ;;  %v377_v50 = vpop.xlane.xlu0 %376 }
 0x239   :  { %v383_v51 = vpop.xlane.xlu1 %382 }
 0x23a   :  { %v384_v52 = vadd.f32 %v383_v51, %v377_v50 }
 0x23c   :  { %457 = vlog2.f32 %v384_v52  ;;  %v329_v55 = vpop.xlane.xlu0 %328 }
 0x23d   :  { %v330_v58 = vmul.f32 2.0, %v329_v55 }
 0x242   :  { %v456_v53 = vpop.eup %455 }
 0x243   :  { %v362_v54 = vmul.f32 0.6931472, %v456_v53 }
 0x245   :  { %v363_v59 = vadd.f32 %v362_v54, %v347_v27 }
 0x246   :  { %v458_v56 = vpop.eup %457 }
 0x247   :  { %v386_v57 = vmul.f32 0.6931472, %v458_v56  ;;  %v364_v61 = vsub.f32 %v363_v59, %v330_v58 }
 0x249   :  { %v387_v60 = vadd.f32 %v386_v57, %v371_v31 }
 0x24b   :  { %v388_v62 = vsub.f32 %v387_v60, %v330_v58 }
 0x24d   :  { %v389_v63 = vadd.f32 %v388_v62, %v364_v61 }
 0x24f   :  { %v390_v0 = vrot.slane %v389_v63, 4 }
 0x251   :  { %v391_v1 = vadd.f32 %v390_v0, %v389_v63 }
 0x253   :  { %v392_v2 = vrot.slane %v391_v1, 2 }
 0x255   :  { %v393_v3 = vadd.f32 %v392_v2, %v391_v1 }
 0x257   :  { %v394_v4 = vrot.slane %v393_v3, 1 }
 0x259   :  { %v395_v5 = vadd.f32 %v394_v4, %v393_v3 }
 0x25b   :  { %397 = vst.msk [vmem:[#allocation7] sm:$0x1] %vm396_vm3, %v395_v5 }
 0x25c   :  { %514 = shalt.err (!%p511_p6)
}
 0x25d   :  { %s515_s9 = scalar_lea.hbm %s613_s2, 16 }
 0x25e   :  { %p516_p7 = scmp.ne.s32.totalorder %s613_s2, %s515_s9  ;;  %p519_p8 = scmp.lt.u32.totalorder %s515_s9, %s613_s2 }
 0x260   :  { %p521_p9 = pnand %p519_p8, %p516_p7 }
 0x262   :  { %524 = shalt.err (!%p521_p9)
}
 0x263   :  { %407 = dma.vmem_to_hbm [thread:$0]  %s405_s4, 16, %s613_s2, [#allocation4]  }
 0x264   :  { %529 = dma.done.wait [#allocation4], 16  }
 0x265   :  { %530 = vsyncadd [#allocation4], 4294967280 }
 0x266   :  { %411 = vsyncpa [#allocation3], 1 }
 0x267   :  { %412 = vsyncpa [#allocation6], 1 }
 0x268   :  { %413 = vsyncpa [#allocation4], 1 }

</bundles_post_ra>
